<compile_context>
chip_gen: v6e
topology: v6e:2x2x1
jax: 0.10.0
libtpu: 0.0.40
codegen_flags: <defaults>
</compile_context>

<pallas_src>
import jax
import jax.numpy as jnp
from jax.experimental import pallas as pl
from jax.experimental.pallas import tpu as pltpu

LANE = 128
SUBLANE = 8
MAX_TILE_B = 256  # fills the 256-wide MXU row dim on v6e/v7x; 2 passes on v5e


def _round_up(x, m):
    return ((x + m - 1) // m) * m


def gaussian_actor_mean_kernel(x_ref, w_ref, b_ref, mean_ref):
    # mean = x @ W_hn + b : single MXU matmul (f32 accumulate) with the bias folded
    # into the accumulator before the one cast + lane-dense unmasked store.
    mean_ref[...] = (
        jnp.dot(x_ref[...], w_ref[...], preferred_element_type=jnp.float32)
        + b_ref[...]
    ).astype(mean_ref.dtype)


def prepare_gaussian_actor_params(weight, bias, log_std, *, operand_dtype=None):
    """One-time (per optimizer step) parameter plumbing, hoisted off the hot path.

    weight: [n_act, H] (nn.Linear layout), bias: [n_act], log_std: [n_act].
    operand_dtype: e.g. jnp.bfloat16 for the native-bf16 MXU path on v6e/v7x.
    """
    n_act, H = weight.shape
    n_pad = _round_up(n_act, LANE)  # lane-dense output width (128); do NOT round to 256
    w_dtype = weight.dtype if operand_dtype is None else operand_dtype
    w_hn = (
        jnp.zeros((H, n_pad), w_dtype).at[:, :n_act].set(weight.T.astype(w_dtype))
    )
    # bias stays f32: it is added straight to the f32 MXU accumulator in-kernel.
    b_pad = jnp.zeros((1, n_pad), jnp.float32).at[:, :n_act].set(bias.astype(jnp.float32))
    std = jnp.exp(log_std)  # input-independent; plain JAX, not a kernel output
    return {"w_hn": w_hn, "b_pad": b_pad, "std": std, "n_act": n_act}


def gaussian_actor_forward(feature, params, *, return_padded=False):
    """Hot path. Returns (mean [B, n_act], std [n_act]) — the Normal(mean, std) params.

    If return_padded=True, mean is returned as the lane-dense [B_pad, 128] slab
    (columns >= n_act are bias-only / zero-padded) so consumers can skip the slice.
    """
    w_hn = params["w_hn"]
    b_pad = params["b_pad"]
    n_act = params["n_act"]
    B, H = feature.shape
    n_pad = w_hn.shape[1]

    x = feature.astype(w_hn.dtype)

    # Batch tiling: one tile if B fits, else a grid of 256-row tiles sharded
    # across TensorCores on v7x ("parallel" is a no-op on 1-TC chips).
    B8 = _round_up(B, SUBLANE)
    if B8 <= MAX_TILE_B:
        tile_b, B_pad = B8, B8
    else:
        tile_b, B_pad = MAX_TILE_B, _round_up(B, MAX_TILE_B)
    if B_pad != B:
        x = jnp.pad(x, ((0, B_pad - B), (0, 0)))
    grid_b = B_pad // tile_b

    out_dtype = feature.dtype
    cost = pl.CostEstimate(
        flops=2 * B_pad * H * n_pad,
        transcendentals=0,
        bytes_accessed=(
            x.size * x.dtype.itemsize
            + w_hn.size * w_hn.dtype.itemsize
            + b_pad.size * b_pad.dtype.itemsize
            + B_pad * n_pad * jnp.dtype(out_dtype).itemsize
        ),
    )

    mean_padded = pl.pallas_call(
        gaussian_actor_mean_kernel,
        out_shape=jax.ShapeDtypeStruct((B_pad, n_pad), out_dtype),
        grid=(grid_b,),
        in_specs=[
            # x tile: lane dim = H (full array dim, legal) — cheaper than padding K.
            pl.BlockSpec((tile_b, H), lambda i: (i, 0),
                         memory_space=pltpu.MemorySpace.VMEM),
            # weight / bias: same block every grid step (resident across the batch loop).
            pl.BlockSpec((H, n_pad), lambda i: (0, 0),
                         memory_space=pltpu.MemorySpace.VMEM),
            pl.BlockSpec((1, n_pad), lambda i: (0, 0),
                         memory_space=pltpu.MemorySpace.VMEM),
        ],
        out_specs=pl.BlockSpec((tile_b, n_pad), lambda i: (i, 0),
                               memory_space=pltpu.MemorySpace.VMEM),
        compiler_params=pltpu.CompilerParams(dimension_semantics=("parallel",)),
        cost_estimate=cost,
    )(x, w_hn, b_pad)

    std = params["std"].astype(out_dtype)
    if return_padded:
        return mean_padded, std
    return mean_padded[:B, :n_act], std


if __name__ == "__main__":
    # Module hyperparameters (args.hidden_dim, n_act)
    hidden_dim = 32
    n_act = 6
    batch = 8

    key = jax.random.PRNGKey(0)
    k_x, k_w, k_b, k_x2 = jax.random.split(key, 4)

    # Deterministic parameter init mirroring nn.Linear defaults:
    # U(-1/sqrt(fan_in), 1/sqrt(fan_in)); log_std = -0.5 * ones(n_act).
    bound = 1.0 / jnp.sqrt(jnp.float32(hidden_dim))
    weight = jax.random.uniform(k_w, (n_act, hidden_dim), jnp.float32, -bound, bound)
    bias = jax.random.uniform(k_b, (n_act,), jnp.float32, -bound, bound)
    log_std = -0.5 * jnp.ones((n_act,), jnp.float32)

    # One-time parameter prep (hoisted out of the per-forward hot path).
    params = prepare_gaussian_actor_params(weight, bias, log_std)

    # Case 1: small batch (typical single-env actor step).
    feature = jax.random.normal(k_x, (batch, hidden_dim), jnp.float32)
    mean, std = gaussian_actor_forward(feature, params)
    jax.block_until_ready((mean, std))

    mean_ref = feature @ weight.T + bias
    std_ref = jnp.exp(log_std)
    assert mean.shape == (batch, n_act) and std.shape == (n_act,)
    assert jnp.allclose(mean, mean_ref, atol=1e-5, rtol=1e-5)
    assert jnp.allclose(std, std_ref, atol=1e-6, rtol=1e-6)

    # Case 2: batched rollout (exercises the B-grid / partial-tile padding path).
    big_batch = 264  # not a multiple of the 256-row tile
    feature_b = jax.random.normal(k_x2, (big_batch, hidden_dim), jnp.float32)
    mean_b, std_b = gaussian_actor_forward(feature_b, params)
    jax.block_until_ready((mean_b, std_b))
    mean_b_ref = feature_b @ weight.T + bias
    assert mean_b.shape == (big_batch, n_act)
    assert jnp.allclose(mean_b, mean_b_ref, atol=1e-5, rtol=1e-5)

    print("KERNEL_OK")
</pallas_src>

<mosaic_0001>
module attributes {stable_mosaic.version = 11 : i64} {
  func.func @gaussian_actor_mean_kernel(%arg0: i32, %arg1: memref<8x32xf32, #tpu.memory_space<vmem>>, %arg2: memref<32x128xf32, #tpu.memory_space<vmem>>, %arg3: memref<1x128xf32, #tpu.memory_space<vmem>>, %arg4: memref<8x128xf32, #tpu.memory_space<vmem>>) attributes {dimension_semantics = [#tpu.dimension_semantics<parallel>], iteration_bounds = array<i64: 1>, scalar_prefetch = 0 : i64, scratch_operands = 0 : i64, tpu.core_type = #tpu.core_type<tc>, window_params = [{transform_indices = @transform_0, window_bounds = array<i64: 8, 32>}, {pipeline_mode = #tpu.pipeline_mode<synchronous>, transform_indices = @transform_1, window_bounds = array<i64: 32, 128>}, {pipeline_mode = #tpu.pipeline_mode<synchronous>, transform_indices = @transform_2, window_bounds = array<i64: 1, 128>}, {transform_indices = @transform_3, window_bounds = array<i64: 8, 128>}]} {
    %c0 = arith.constant 0 : index
    %c0_0 = arith.constant 0 : index
    %0 = vector.load %arg1[%c0, %c0_0] : memref<8x32xf32, #tpu.memory_space<vmem>>, vector<8x32xf32>
    %c0_1 = arith.constant 0 : index
    %c0_2 = arith.constant 0 : index
    %1 = vector.load %arg2[%c0_1, %c0_2] : memref<32x128xf32, #tpu.memory_space<vmem>>, vector<32x128xf32>
    %cst = arith.constant dense<0.000000e+00> : vector<8x128xf32>
    %2 = tpu.matmul %0, %1, %cst {dimension_numbers = #tpu.dot_dimension_numbers<[1], [0], [0], [1], [0, 0, 1, 1], [], []>} : vector<8x32xf32>, vector<32x128xf32>, vector<8x128xf32> -> vector<8x128xf32>
    %c0_3 = arith.constant 0 : index
    %c0_4 = arith.constant 0 : index
    %3 = vector.load %arg3[%c0_3, %c0_4] : memref<1x128xf32, #tpu.memory_space<vmem>>, vector<1x128xf32>
    %4 = vector.broadcast %3 : vector<1x128xf32> to vector<8x128xf32>
    %5 = arith.addf %2, %4 : vector<8x128xf32>
    %c0_5 = arith.constant 0 : index
    %c0_6 = arith.constant 0 : index
    %6 = vector.load %arg4[%c0_5, %c0_6] : memref<8x128xf32, #tpu.memory_space<vmem>>, vector<8x128xf32>
    tpu.vector_store %arg4[%c0_5, %c0_6], %5 {strides = array<i32>} : memref<8x128xf32, #tpu.memory_space<vmem>>, vector<8x128xf32>,
    return
  }
  func.func @transform_0(%arg0: i32) -> (i32, i32) {
    %c0_i32 = arith.constant 0 : i32
    %c0_i32_0 = arith.constant 0 : i32
    return %arg0, %c0_i32 : i32, i32
  }
  func.func @transform_1(%arg0: i32) -> (i32, i32) {
    %c0_i32 = arith.constant 0 : i32
    %c0_i32_0 = arith.constant 0 : i32
    %c0_i32_1 = arith.constant 0 : i32
    return %c0_i32, %c0_i32_0 : i32, i32
  }
  func.func @transform_2(%arg0: i32) -> (i32, i32) {
    %c0_i32 = arith.constant 0 : i32
    %c0_i32_0 = arith.constant 0 : i32
    %c0_i32_1 = arith.constant 0 : i32
    return %c0_i32, %c0_i32_0 : i32, i32
  }
  func.func @transform_3(%arg0: i32) -> (i32, i32) {
    %c0_i32 = arith.constant 0 : i32
    %c0_i32_0 = arith.constant 0 : i32
    return %arg0, %c0_i32 : i32, i32
  }
}

</mosaic_0001>

<bundles_post_ra>
// kernel: tpu_custom_call.1
= control target key start
LH: loop header
LB: loop body
LE: loop exit
PB: predicated region body
PF: predicated region fallthrough
CT: control target
= control target key end

     0   :  { %8 = vsyncpa [#allocation3], 0  ;;  %s274_s0 = inlined_call_operand.hbm [shape: f32[8,32], index: 0, kind: input, shape index: {}]   ;;  %s275_s1 = inlined_call_operand.hbm [shape: f32[32,128], index: 1, kind: input, shape index: {}]   ;;  %s276_s2 = inlined_call_operand.vmem [shape: f32[1,128], index: 2, kind: input, shape index: {}]   ;;  %s277_s3 = inlined_call_operand.hbm [shape: f32[8,128], index: 3, kind: output, shape index: {}]  }
   0x1   :  { %9 = vsyncpa [#allocation6], 0 }
   0x2   :  { %10 = vsyncpa [#allocation4], 0  ;;  %s235_s12 = smov [#allocation2]   ;;  %s236_s14 = smov [#allocation5]  }
   0x3   :  { %s17_s13 = sshll.u32 %s235_s12, 4  ;;  %s26_s15 = sshll.u32 %s236_s14, 4  ;;  %s18_s13 = int_to_ptr.vmem [resolvable:$true] %s17_s13  ;;  %s27_s15 = int_to_ptr.vmem [resolvable:$true] %s26_s15 }
   0x4   :  { %s177_s16 = scalar_lea.vmem %s18_s13, 128  ;;  %p182_p1 = scmp.lt.s32.totalorder %s18_s13, %s18_s13 }
   0x5   :  { %p178_p0 = scmp.ne.s32.totalorder %s18_s13, %s177_s16  ;;  %p183_p2 = scmp.lt.s32.totalorder %s177_s16, %s177_s16 }
   0x7   :  { %p184_p3 = por %p183_p2, %p182_p1 }
   0x9   :  { %p185_p4 = pnand %p184_p3, %p178_p0 }
   0xb   :  { %188 = shalt.err (!%p185_p4)
}
   0xc   :  { %20 = dma.hbm_to_vmem [thread:$0]  %s274_s0, 128, %s18_s13, [#allocation3]  }
   0xd   :  { %s197_s19 = scalar_lea.vmem %s27_s15, 512  ;;  %p202_p6 = scmp.lt.s32.totalorder %s27_s15, %s27_s15 }
   0xe   :  { %p198_p5 = scmp.ne.s32.totalorder %s27_s15, %s197_s19  ;;  %p203_p7 = scmp.lt.s32.totalorder %s197_s19, %s197_s19 }
  0x10   :  { %p204_p8 = por %p203_p7, %p202_p6 }
  0x12   :  { %p205_p9 = pnand %p204_p8, %p198_p5 }
  0x14   :  { %208 = shalt.err (!%p205_p9)
}
  0x15   :  { %s237_s20 = smov 128   ;;  %s238_s21 = smov 8  }
  0x16   :  { %32 = dma.hbm_to_vmem [thread:$0]  %s275_s1, 512, %s27_s15, [#allocation6], %s237_s20, %s237_s20, %s238_s21  }
  0x17   :  { %229 = dma.done.wait [#allocation3], 128  }
  0x18   :  { %230 = vsyncadd [#allocation3], 4294967168 }
  0x19   :  { %231 = dma.done.wait [#allocation6], 512  }
  0x1a   :  { %232 = vsyncadd [#allocation6], 4294966784  ;;  %v239_v0 = vmov 0.0   ;;  %vm240_vm0 = vmmov 0   ;;  %v45_v1 = vld [vmem:[#allocation5 + $0x18] sm:$0xff]  ;;  %v44_v2 = vld [vmem:[#allocation5 + $0x10] sm:$0xff] }
  0x1b   :  { %151 = vmatprep.subr.mxu0 %v239_v0  ;;  %159 = vmatprep.mubr.msk.f32.mxu0 %vm240_vm0, %v239_v0  ;;  %v43_v3 = vld [vmem:[#allocation5 + $0x8] sm:$0xff]  ;;  %v42_v4 = vld [vmem:[#allocation5] sm:$0xff]  ;;  %v41_v5 = vld [vmem:[#allocation2] sm:$0xff]  ;;  %vm53_vm1 = vcmask 261120   ;;  %s241_s24 = smov [#allocation7]  }
  0x1c   :  { %152 = vmatpush3.msra.mxu0 %v45_v1  ;;  %v144_v6 = vld [vmem:[%s276_s2] ss:$0 sm:$0xff]  ;;  %s134_s25 = sshll.u32 %s241_s24, 4  ;;  %s135_s25 = int_to_ptr.vmem [resolvable:$true] %s134_s25 }
  0x1d   :  { %153 = vmatprep.subr.mxu0 %v239_v0  ;;  %s209_s26 = scalar_lea.vmem %s135_s25, 128  ;;  %p214_p11 = scmp.lt.s32.totalorder %s135_s25, %s135_s25 }
  0x1e   :  { %154 = vmatpush3.msra.mxu0 %v44_v2  ;;  %p210_p10 = scmp.ne.s32.totalorder %s135_s25, %s209_s26  ;;  %p215_p12 = scmp.lt.s32.totalorder %s209_s26, %s209_s26 }
  0x1f   :  { %155 = vmatprep.subr.mxu0 %v239_v0 }
  0x20   :  { %156 = vmatpush3.msra.mxu0 %v43_v3  ;;  %p216_p13 = por %p215_p12, %p214_p11 }
  0x21   :  { %157 = vmatprep.subr.mxu0 %v239_v0 }
  0x22   :  { %158 = vmatpush3.msra.mxu0 %v42_v4  ;;  %p217_p0 = pnand %p216_p13, %p210_p10 }
  0x23   :  { %160 = vmatmul.mubr.msk.f32.vlgmr.msra.gmra.mxu0 %vm53_vm1, %v41_v5 }
  0xe3   :  { %v123_v7 = vpop.f32.mrf.mxu0 }
  0xe4   :  { %v124_v8 = vadd.f32 %v144_v6, %v123_v7 }
  0xe5   :  { %v161_v9 = vpop.f32.mrf.mxu0 }
  0xe6   :  { %127 = vst [vmem:[#allocation7] sm:$0xff] %v124_v8 }
  0xe7   :  { %220 = shalt.err (!%p217_p0)
}
  0xe8   :  { %137 = dma.vmem_to_hbm [thread:$0]  %s135_s25, 128, %s277_s3, [#allocation4]  }
  0xe9   :  { %233 = dma.done.wait [#allocation4], 128  }
  0xea   :  { %234 = vsyncadd [#allocation4], 4294967168 }
  0xeb   :  { %141 = vsyncpa [#allocation3], 1 }
  0xec   :  { %142 = vsyncpa [#allocation6], 1 }
  0xed   :  { %143 = vsyncpa [#allocation4], 1 }

</bundles_post_ra>
